<compile_context>
chip_gen: v6e
topology: v6e:2x2x1
jax: 0.10.0
libtpu: 0.0.40
codegen_flags: <defaults>
</compile_context>

<pallas_src>
import functools

import jax
import jax.numpy as jnp
from jax.experimental import pallas as pl
from jax.experimental.pallas import tpu as pltpu


# ---------------------------------------------------------------------------
# Fused kernel: hidden (linear + ReLU) layers followed by final (linear + softmax).
# ---------------------------------------------------------------------------
def _fused_mlp_softmax_kernel(*refs, num_layers):
    """refs = (x_ref, w0_ref, b0_ref, ..., w{L-1}_ref, b{L-1}_ref, o_ref).

    x_ref: [TB, In]      fp32 activations tile (cast to bf16 in-kernel for the MXU)
    w_ref: [In_l, Out_l] bf16
    b_ref: [1, Out_l]    fp32
    o_ref: [TB, Out]     fp32 softmax probabilities
    """
    x_ref = refs[0]
    o_ref = refs[-1]

    x = x_ref[...].astype(jnp.bfloat16)  # in-kernel cast: free VPU op under slack
    y = None
    for layer in range(num_layers):
        w = refs[1 + 2 * layer][...]     # bf16 [In, Out]
        b = refs[2 + 2 * layer][...]     # fp32 [1, Out]
        # MXU matmul with fp32 accumulation; epilogue math stays fp32.
        y = jnp.dot(x, w, preferred_element_type=jnp.float32) + b
        if layer < num_layers - 1:
            x = jnp.maximum(y, 0.0).astype(jnp.bfloat16)  # ReLU, back to bf16

    # Numerically-stable softmax over dim=1 (full feature width, no padding).
    m = jnp.max(y, axis=-1, keepdims=True)
    e = jnp.exp(y - m)
    denom = jnp.sum(e, axis=-1, keepdims=True)
    o_ref[...] = (e / denom).astype(o_ref.dtype)  # exact reciprocal: rows sum to 1


# ---------------------------------------------------------------------------
# Wrapper
# ---------------------------------------------------------------------------
def _pick_batch_tile(batch):
    """Batch tile selection.

    Small batches: one block (always legal: block dim == array dim).
    Large batches: biggest tile <= 2048 that divides the batch AND yields a grid of
    >= 2 steps, so dimension_semantics=("parallel",) can shard tiles across both
    TensorCores on v7x. If nothing divides cleanly, return 2048 and let the wrapper
    pad the batch (never a monolithic block that could exceed VMEM).
    """
    if batch <= 1024:
        return batch
    for tb in (2048, 1024, 512, 256, 128, 64, 32, 16, 8):
        if batch % tb == 0 and batch // tb >= 2:
            return tb
    return 2048


def init_q_network_params(key, network_sizes=(64, 32)):
    """nn.Linear-style U(-1/sqrt(fan_in), 1/sqrt(fan_in)) init, pre-converted to the
    kernel's layout/dtypes (W: bf16 [in, out]; b: fp32 [1, out]) so the forward pass
    does no per-call pad/cast work."""
    params = []
    for k in range(len(network_sizes) - 1):
        fan_in, fan_out = network_sizes[k], network_sizes[k + 1]
        key, kw, kb = jax.random.split(key, 3)
        bound = 1.0 / jnp.sqrt(fan_in)
        w = jax.random.uniform(kw, (fan_in, fan_out), jnp.float32, -bound, bound)
        b = jax.random.uniform(kb, (1, fan_out), jnp.float32, -bound, bound)
        params.append((w.astype(jnp.bfloat16), b.astype(jnp.float32)))
    return params


@jax.jit
def q_network_forward(state, params):
    """Forward pass: hidden layers (linear+ReLU), last layer (linear+softmax dim=1)."""
    batch, in_dim = state.shape
    num_layers = len(params)
    out_features = params[-1][0].shape[1]

    tb = _pick_batch_tile(batch)
    padded_batch = pl.cdiv(batch, tb) * tb

    x = state.astype(jnp.float32)           # no-op when state is already fp32
    if padded_batch != batch:
        # Rare fallback path: pad batch to a tile multiple (pad rows sliced off below).
        x = jnp.pad(x, ((0, padded_batch - batch), (0, 0)))
    grid = (padded_batch // tb,)

    args = [x]
    in_specs = [
        pl.BlockSpec((tb, in_dim), lambda i: (i, 0),
                     memory_space=pltpu.MemorySpace.VMEM)
    ]
    for (w, b) in params:
        args.append(w)   # bf16 [in, out], already kernel-ready
        args.append(b)   # fp32 [1, out]
        # Full-array blocks with a constant block index -> DMA'd once and kept
        # VMEM-resident across all batch tiles.
        in_specs.append(pl.BlockSpec(w.shape, lambda i: (0, 0),
                                     memory_space=pltpu.MemorySpace.VMEM))
        in_specs.append(pl.BlockSpec(b.shape, lambda i: (0, 0),
                                     memory_space=pltpu.MemorySpace.VMEM))

    out_specs = pl.BlockSpec((tb, out_features), lambda i: (i, 0),
                             memory_space=pltpu.MemorySpace.VMEM)

    # Honest VMEM budget: double-buffered fp32 input/output tiles + resident weights
    # + fp32 intermediate activations, with headroom. Capped at 32 MiB (v7x scoped).
    weight_bytes = sum(int(a.size) * a.dtype.itemsize for a in args[1:])
    io_tile_bytes = tb * in_dim * 4 + tb * out_features * 4
    act_bytes = sum(tb * w.shape[1] * 4 for (w, _) in params)
    vmem_limit = int(min(32 << 20,
                         max(4 << 20,
                             2 * io_tile_bytes + weight_bytes + act_bytes + (1 << 20))))

    kernel = functools.partial(_fused_mlp_softmax_kernel, num_layers=num_layers)

    out = pl.pallas_call(
        kernel,
        out_shape=jax.ShapeDtypeStruct((padded_batch, out_features), jnp.float32),
        grid=grid,
        in_specs=in_specs,
        out_specs=out_specs,
        compiler_params=pltpu.CompilerParams(
            dimension_semantics=("parallel",),  # batch tiles independent -> 2 TCs on v7x
            vmem_limit_bytes=vmem_limit,
        ),
    )(*args)

    if padded_batch != batch:
        out = out[:batch]
    return out


# ---------------------------------------------------------------------------
# Demo / self-test
# ---------------------------------------------------------------------------
if __name__ == "__main__":
    def _ref_forward(state, params):
        """Plain-JAX reference with the same bf16-operand / fp32-accumulate math.
        (bf16 matmul operands deviate from PyTorch's fp32 Linear by ~1e-2 rel —
        intentional MXU-friendly choice.)"""
        x = state.astype(jnp.bfloat16)
        for (w, b) in params[:-1]:
            y = jnp.dot(x, w, preferred_element_type=jnp.float32) + b
            x = jnp.maximum(y, 0.0).astype(jnp.bfloat16)
        w, b = params[-1]
        y = jnp.dot(x, w, preferred_element_type=jnp.float32) + b
        return jax.nn.softmax(y, axis=1)

    key = jax.random.PRNGKey(0)
    batch = 32

    # (64, 32): module default — single Linear + softmax.
    # (64, 128, 32): exercises the fused hidden (linear + ReLU) path too.
    for network_sizes in ((64, 32), (64, 128, 32)):
        key, k_params, k_x = jax.random.split(key, 3)
        params = init_q_network_params(k_params, network_sizes)
        state = jax.random.normal(k_x, (batch, network_sizes[0]), jnp.float32)

        out = jax.block_until_ready(q_network_forward(state, params))
        ref = _ref_forward(state, params)

        assert out.shape == (batch, network_sizes[-1])
        assert jnp.allclose(jnp.sum(out, axis=1), 1.0, atol=1e-4), \
            "softmax rows must sum to 1"
        assert jnp.allclose(out, ref, atol=2e-3, rtol=2e-2), \
            "Pallas output mismatch vs JAX reference"

    print("KERNEL_OK")
</pallas_src>

<mosaic_0001>
module attributes {stable_mosaic.version = 11 : i64} {
  func.func @_fused_mlp_softmax_kernel(%arg0: i32, %arg1: memref<32x64xf32, #tpu.memory_space<vmem>>, %arg2: memref<64x32xbf16, #tpu.memory_space<vmem>>, %arg3: memref<1x32xf32, #tpu.memory_space<vmem>>, %arg4: memref<32x32xf32, #tpu.memory_space<vmem>>) attributes {dimension_semantics = [#tpu.dimension_semantics<parallel>], iteration_bounds = array<i64: 1>, scalar_prefetch = 0 : i64, scratch_operands = 0 : i64, tpu.core_type = #tpu.core_type<tc>, window_params = [{transform_indices = @transform_0, window_bounds = array<i64: 32, 64>}, {pipeline_mode = #tpu.pipeline_mode<synchronous>, transform_indices = @transform_1, window_bounds = array<i64: 64, 32>}, {pipeline_mode = #tpu.pipeline_mode<synchronous>, transform_indices = @transform_2, window_bounds = array<i64: 1, 32>}, {transform_indices = @transform_3, window_bounds = array<i64: 32, 32>}]} {
    %c0 = arith.constant 0 : index
    %c0_0 = arith.constant 0 : index
    %0 = vector.load %arg1[%c0, %c0_0] : memref<32x64xf32, #tpu.memory_space<vmem>>, vector<32x64xf32>
    %1 = arith.truncf %0 : vector<32x64xf32> to vector<32x64xbf16>
    %c0_1 = arith.constant 0 : index
    %c0_2 = arith.constant 0 : index
    %2 = vector.load %arg2[%c0_1, %c0_2] : memref<64x32xbf16, #tpu.memory_space<vmem>>, vector<64x32xbf16>
    %c0_3 = arith.constant 0 : index
    %c0_4 = arith.constant 0 : index
    %3 = vector.load %arg3[%c0_3, %c0_4] : memref<1x32xf32, #tpu.memory_space<vmem>>, vector<1x32xf32>
    %cst = arith.constant dense<0.000000e+00> : vector<32x32xf32>
    %4 = tpu.matmul %1, %2, %cst {dimension_numbers = #tpu.dot_dimension_numbers<[1], [0], [0], [1], [0, 0, 1, 1], [], []>} : vector<32x64xbf16>, vector<64x32xbf16>, vector<32x32xf32> -> vector<32x32xf32>
    %5 = vector.broadcast %3 : vector<1x32xf32> to vector<32x32xf32>
    %6 = arith.addf %4, %5 : vector<32x32xf32>
    %cst_5 = arith.constant dense<0xFF800000> : vector<32xf32>
    %7 = vector.multi_reduction <maximumf>, %6, %cst_5 [1] : vector<32x32xf32> to vector<32xf32>
    %8 = vector.shape_cast %7 : vector<32xf32> to vector<32x1xf32>
    %9 = vector.broadcast %8 : vector<32x1xf32> to vector<32x32xf32>
    %10 = arith.subf %6, %9 : vector<32x32xf32>
    %11 = math.exp %10 : vector<32x32xf32>
    %cst_6 = arith.constant dense<0.000000e+00> : vector<32xf32>
    %12 = vector.multi_reduction <add>, %11, %cst_6 [1] : vector<32x32xf32> to vector<32xf32>
    %13 = vector.shape_cast %12 : vector<32xf32> to vector<32x1xf32>
    %14 = vector.broadcast %13 : vector<32x1xf32> to vector<32x32xf32>
    %15 = arith.divf %11, %14 : vector<32x32xf32>
    %c0_7 = arith.constant 0 : index
    %c0_8 = arith.constant 0 : index
    %16 = vector.load %arg4[%c0_7, %c0_8] : memref<32x32xf32, #tpu.memory_space<vmem>>, vector<32x32xf32>
    tpu.vector_store %arg4[%c0_7, %c0_8], %15 {strides = array<i32>} : memref<32x32xf32, #tpu.memory_space<vmem>>, vector<32x32xf32>,
    return
  }
  func.func @transform_0(%arg0: i32) -> (i32, i32) {
    %c0_i32 = arith.constant 0 : i32
    %c0_i32_0 = arith.constant 0 : i32
    return %arg0, %c0_i32 : i32, i32
  }
  func.func @transform_1(%arg0: i32) -> (i32, i32) {
    %c0_i32 = arith.constant 0 : i32
    %c0_i32_0 = arith.constant 0 : i32
    %c0_i32_1 = arith.constant 0 : i32
    return %c0_i32, %c0_i32_0 : i32, i32
  }
  func.func @transform_2(%arg0: i32) -> (i32, i32) {
    %c0_i32 = arith.constant 0 : i32
    %c0_i32_0 = arith.constant 0 : i32
    %c0_i32_1 = arith.constant 0 : i32
    return %c0_i32, %c0_i32_0 : i32, i32
  }
  func.func @transform_3(%arg0: i32) -> (i32, i32) {
    %c0_i32 = arith.constant 0 : i32
    %c0_i32_0 = arith.constant 0 : i32
    return %arg0, %c0_i32 : i32, i32
  }
}

</mosaic_0001>

<bundles_post_ra>
// kernel: q_network_forward.1
= control target key start
LH: loop header
LB: loop body
LE: loop exit
PB: predicated region body
PF: predicated region fallthrough
CT: control target
= control target key end

     0   :  { %vm61_vm0 = vcmask 523264   ;;  %s317_s0 = inlined_call_operand.vmem [shape: f32[32,64], index: 0, kind: input, shape index: {}]   ;;  %s318_s1 = inlined_call_operand.vmem [shape: bf16[64,32], index: 1, kind: input, shape index: {}]   ;;  %s319_s2 = inlined_call_operand.vmem [shape: f32[1,32], index: 2, kind: input, shape index: {}]   ;;  %s320_s3 = inlined_call_operand.hbm [shape: f32[32,32], index: 3, kind: output, shape index: {}]  }
   0x1   :  { %v210_v0 = vld [vmem:[%s318_s1 + $0x18] sm:$0xff]   ;;  %v211_v1 = vld [vmem:[%s318_s1 + $0x10] sm:$0xff]   ;;  %v212_v2 = vld [vmem:[%s318_s1 + $0x8] sm:$0xff]  }
   0x2   :  { %195 = vmatprep.subr.bf16.mxu0 %v210_v0  ;;  %v16_v3 = vld [vmem:[%s317_s0] sm:$0xff]  ;;  %v17_v4 = vld [vmem:[%s317_s0 + $0x8] sm:$0xff] }
   0x3   :  { %196 = vmatpush3.bf16.msra.mxu0 %v210_v0  ;;  %v20_v5 = vpack.c.bf16 %v17_v4, %v16_v3 }
   0x4   :  { %197 = vmatprep.subr.bf16.mxu0 %v211_v1 }
   0x5   :  { %8 = vsyncpa [#allocation3], 0  ;;  %203 = vmatprep.mubr.msk.bf16.mxu0 %vm61_vm0, %v20_v5  ;;  %v213_v6 = vld [vmem:[%s318_s1] sm:$0xff]   ;;  %v18_v7 = vld [vmem:[%s317_s0 + $0x10] sm:$0xff]  ;;  %vm117_vm1 = vcmask 261120  }
   0x6   :  { %v19_v8 = vld [vmem:[%s317_s0 + $0x18] sm:$0xff]  ;;  %v182_v10 = vld [vmem:[%s319_s2] ss:$0 sm:$0xff]  ;;  %s252_s0 = smov [#allocation2]  }
   0x7   :  { %198 = vmatpush3.bf16.msra.mxu0 %v211_v1  ;;  %v21_v9 = vpack.c.bf16 %v19_v8, %v18_v7  ;;  %s171_s1 = sshll.u32 %s252_s0, 4  ;;  %s172_s1 = int_to_ptr.vmem [resolvable:$true] %s171_s1 }
   0x8   :  { %199 = vmatprep.subr.bf16.mxu0 %v212_v2  ;;  %s230_s2 = scalar_lea.vmem %s172_s1, 512  ;;  %p235_p1 = scmp.lt.s32.totalorder %s172_s1, %s172_s1 }
   0x9   :  { %p231_p0 = scmp.ne.s32.totalorder %s172_s1, %s230_s2  ;;  %p236_p2 = scmp.lt.s32.totalorder %s230_s2, %s230_s2 }
   0xb   :  { %200 = vmatpush3.bf16.msra.mxu0 %v212_v2  ;;  %p237_p3 = por %p236_p2, %p235_p1 }
   0xc   :  { %201 = vmatprep.subr.bf16.mxu0 %v213_v6 }
   0xd   :  { %p238_p4 = pnand %p237_p3, %p231_p0 }
   0xf   :  { %202 = vmatpush3.bf16.msra.mxu0 %v213_v6 }
  0x12   :  { %204 = vmatmul.mubr.msk.bf16.vlgmr.msra.gmra.mxu0 %vm61_vm0, %v21_v9 }
  0xd2   :  { %v205_v11 = vpop.f32.mrf.mxu0 }
  0xd3   :  { %v111_v12 = vadd.f32 %v205_v11, %v182_v10 }
  0xd4   :  { %v102_v13 = vpop.f32.mrf.mxu0 }
  0xd5   :  { %v103_v14 = vadd.f32 %v182_v10, %v102_v13  ;;  %v124_v15 = vsel %vm117_vm1, %v111_v12, -inf }
  0xd6   :  { %125 = vmax.xlane.f32.xlu1 %v124_v15  ;;  %v206_v16 = vpop.f32.mrf.mxu0 }
  0xd7   :  { %v114_v17 = vadd.f32 %v206_v16, %v182_v10  ;;  %v118_v18 = vsel %vm117_vm1, %v103_v14, -inf }
  0xd8   :  { %v105_v19 = vpop.f32.mrf.mxu0  ;;  %119 = vmax.xlane.f32.xlu0 %v118_v18 }
  0xd9   :  { %v106_v20 = vadd.f32 %v182_v10, %v105_v19  ;;  %v127_v21 = vsel %vm117_vm1, %v114_v17, -inf }
  0xda   :  { %128 = vmax.xlane.f32.xlu1 %v127_v21 }
  0xdb   :  { %v121_v22 = vsel %vm117_vm1, %v106_v20, -inf }
  0xdc   :  { %122 = vmax.xlane.f32.xlu0 %v121_v22 }
 0x15f   :  { %v126_v23 = vpop.xlane.xlu1 %125 }
 0x160   :  { %v132_v24 = vsub.f32 %v111_v12, %v126_v23 }
 0x161   :  { %v120_v25 = vpop.xlane.xlu0 %119 }
 0x162   :  { %v130_v26 = vsub.f32 %v103_v14, %v120_v25  ;;  %v138_v28 = vmul.f32 1.442695, %v132_v24 }
 0x163   :  { %v129_v27 = vpop.xlane.xlu1 %128 }
 0x164   :  { %v134_v29 = vmul.f32 1.442695, %v130_v26  ;;  %v133_v30 = vsub.f32 %v114_v17, %v129_v27 }
 0x165   :  { %v123_v31 = vpop.xlane.xlu0 %122 }
 0x166   :  { %214 = vpow2.f32 %v134_v29  ;;  %v131_v32 = vsub.f32 %v106_v20, %v123_v31  ;;  %v140_v33 = vmul.f32 1.442695, %v133_v30 }
 0x167   :  { %216 = vpow2.f32 %v138_v28 }
 0x168   :  { %v136_v34 = vmul.f32 1.442695, %v131_v32 }
 0x16a   :  { %218 = vpow2.f32 %v136_v34 }
 0x16b   :  { %220 = vpow2.f32 %v140_v33 }
 0x173   :  { %v215_v35 = vpop.eup %214 }
 0x174   :  { %v142_v36 = vsel %vm117_vm1, %v215_v35, 0.0  ;;  %v217_v37 = vpop.eup %216 }
 0x175   :  { %143 = vadd.xlane.f32.xlu0 %v142_v36  ;;  %v148_v39 = vsel %vm117_vm1, %v217_v37, 0.0 }
 0x177   :  { %v219_v38 = vpop.eup %218 }
 0x178   :  { %v145_v40 = vsel %vm117_vm1, %v219_v38, 0.0  ;;  %v221_v41 = vpop.eup %220 }
 0x179   :  { %149 = vadd.xlane.f32.xlu0 %v148_v39  ;;  %146 = vadd.xlane.f32.xlu1 %v145_v40  ;;  %v151_v42 = vsel %vm117_vm1, %v221_v41, 0.0 }
 0x17d   :  { %152 = vadd.xlane.f32.xlu1 %v151_v42 }
 0x1fe   :  { %v144_v43 = vpop.xlane.xlu0 %143 }
 0x1ff   :  { %222 = vrcp.f32 %v144_v43 }
 0x202   :  { %v147_v44 = vpop.xlane.xlu1 %146  ;;  %v150_v45 = vpop.xlane.xlu0 %149 }
 0x203   :  { %224 = vrcp.f32 %v147_v44 }
 0x204   :  { %226 = vrcp.f32 %v150_v45 }
 0x206   :  { %v153_v46 = vpop.xlane.xlu1 %152 }
 0x207   :  { %228 = vrcp.f32 %v153_v46 }
 0x20c   :  { %v223_v47 = vpop.eup %222 }
 0x20d   :  { %v155_v48 = vmul.f32 %v223_v47, %v215_v35 }
 0x20f   :  { %162 = vst.msk [vmem:[#allocation2] sm:$0xff] %vm117_vm1, %v155_v48 }
 0x210   :  { %v225_v49 = vpop.eup %224 }
 0x211   :  { %v227_v50 = vpop.eup %226  ;;  %v157_v51 = vmul.f32 %v225_v49, %v219_v38 }
 0x212   :  { %v159_v52 = vmul.f32 %v227_v50, %v217_v37 }
 0x213   :  { %163 = vst.msk [vmem:[#allocation2 + $0x8] sm:$0xff] %vm117_vm1, %v157_v51 }
 0x214   :  { %v229_v53 = vpop.eup %228  ;;  %164 = vst.msk [vmem:[#allocation2 + $0x10] sm:$0xff] %vm117_vm1, %v159_v52 }
 0x215   :  { %v161_v54 = vmul.f32 %v229_v53, %v221_v41 }
 0x217   :  { %165 = vst.msk [vmem:[#allocation2 + $0x18] sm:$0xff] %vm117_vm1, %v161_v54 }
 0x218   :  { %241 = shalt.err (!%p238_p4)
}
 0x219   :  { %s253_s30 = smov 128   ;;  %s254_s4 = smov 8  }
 0x21a   :  { %177 = dma.vmem_to_hbm [thread:$0]  %s172_s1, 512, %s320_s3, [#allocation3], %s253_s30, %s253_s30, %s254_s4  }
 0x21b   :  { %250 = dma.done.wait [#allocation3], 512  }
 0x21c   :  { %251 = vsyncadd [#allocation3], 4294966784 }
 0x21d   :  { %181 = vsyncpa [#allocation3], 1 }

</bundles_post_ra>
